<compile_context>
chip_gen: v6e
topology: v6e:2x2x1
jax: 0.10.0
libtpu: 0.0.40
codegen_flags: <defaults>
</compile_context>

<pallas_src>
import functools

import jax
import jax.numpy as jnp
from jax.experimental import pallas as pl
from jax.experimental.pallas import tpu as pltpu

INPUT_DIM = 270
OUTPUT_DIM = 60
H1, H2, H3 = 512, 256, 128

HEAD_PAD = 128    # 60 logits + 1 value -> lane-dense 128-wide output slab
TB_TARGET = 512   # batch tile (sweet spot for HBM roofline / MXU M-amortization)


def _round_up(x, m):
    return ((x + m - 1) // m) * m


def _cdiv(a, b):
    return -(-a // b)


def _choose_tiles(batch):
    """Pick (num_blocks, tile) minimizing ghost rows while keeping >= 2 even
    grid steps for v7x dual-TensorCore sharding once the batch is big enough."""
    nb = max(1, _cdiv(batch, TB_TARGET))
    if nb == 1 and batch >= 16:
        nb = 2                      # keep both v7x TensorCores busy
    if nb > 1 and nb % 2 == 1:
        nb += 1                     # even step count splits cleanly across 2 TCs
    tb = _round_up(_cdiv(batch, nb), 8)
    return nb, tb


def actor_critic_kernel(
    x_ref,
    w1_ref, b1_ref,
    w2_ref, b2_ref,
    w3_ref, b3_ref,
    wh_ref, bh_ref,
    out_ref,
):
    # fc1 + relu  (bf16 matmul operands, f32 accumulate, f32 bias/relu)
    h = jnp.dot(x_ref[...].astype(jnp.bfloat16), w1_ref[...],
                preferred_element_type=jnp.float32)
    h = jnp.maximum(h + b1_ref[...], 0.0)
    # fc2 + relu
    h = jnp.dot(h.astype(jnp.bfloat16), w2_ref[...],
                preferred_element_type=jnp.float32)
    h = jnp.maximum(h + b2_ref[...], 0.0)
    # fc3 + relu
    h = jnp.dot(h.astype(jnp.bfloat16), w3_ref[...],
                preferred_element_type=jnp.float32)
    h = jnp.maximum(h + b3_ref[...], 0.0)
    # fused actor+critic head -> one lane-dense (tb, 128) f32 store
    out = jnp.dot(h.astype(jnp.bfloat16), wh_ref[...],
                  preferred_element_type=jnp.float32)
    out_ref[...] = out + bh_ref[...]


def prepare_params(params):
    """One-time transform of PyTorch-layout params {(out,in) W, (out,) b} into
    kernel layout: transposed (in,out), fused+padded head, bf16 weights,
    2-D f32 biases."""
    def tw(name):
        W, b = params[name]
        return W.T.astype(jnp.float32), b.astype(jnp.float32)

    w1, b1 = tw("fc1")
    w2, b2 = tw("fc2")
    w3, b3 = tw("fc3")
    wa, ba = tw("actor")
    wc, bc = tw("critic")

    wh = jnp.zeros((H3, HEAD_PAD), jnp.float32)
    wh = wh.at[:, :OUTPUT_DIM].set(wa)
    wh = wh.at[:, OUTPUT_DIM:OUTPUT_DIM + 1].set(wc)
    bh = jnp.zeros((HEAD_PAD,), jnp.float32)
    bh = bh.at[:OUTPUT_DIM].set(ba)
    bh = bh.at[OUTPUT_DIM].set(bc[0])

    return dict(
        w1=w1.astype(jnp.bfloat16), b1=b1.reshape(1, -1),
        w2=w2.astype(jnp.bfloat16), b2=b2.reshape(1, -1),
        w3=w3.astype(jnp.bfloat16), b3=b3.reshape(1, -1),
        wh=wh.astype(jnp.bfloat16), bh=bh.reshape(1, -1),
    )


@jax.jit
def actor_critic_forward(x, prepped):
    """x: (B, INPUT_DIM) f32. prepped: output of prepare_params().
    Returns (logits (B, OUTPUT_DIM) f32, value (B, 1) f32)."""
    B = x.shape[0]
    nb, tb = _choose_tiles(B)
    b_pad = nb * tb

    if b_pad != B:
        x = jnp.pad(x, ((0, b_pad - B), (0, 0)))   # ghost rows only, no K pad

    const = lambda i: (0, 0)   # weights / biases stay resident across the grid
    tiled = lambda i: (i, 0)

    flops = 2 * b_pad * (INPUT_DIM * H1 + H1 * H2 + H2 * H3 + H3 * HEAD_PAD)
    bytes_accessed = (
        b_pad * INPUT_DIM * 4                                        # f32 x
        + (INPUT_DIM * H1 + H1 * H2 + H2 * H3 + H3 * HEAD_PAD) * 2   # bf16 W
        + (H1 + H2 + H3 + HEAD_PAD) * 4                              # f32 b
        + b_pad * HEAD_PAD * 4                                       # f32 out
    )

    out = pl.pallas_call(
        actor_critic_kernel,
        out_shape=jax.ShapeDtypeStruct((b_pad, HEAD_PAD), jnp.float32),
        grid_spec=pltpu.PrefetchScalarGridSpec(
            num_scalar_prefetch=0,
            grid=(nb,),
            in_specs=[
                pl.BlockSpec((tb, INPUT_DIM), tiled),        # x (full 270 K dim)
                pl.BlockSpec((INPUT_DIM, H1), const),        # w1
                pl.BlockSpec((1, H1), const),                # b1
                pl.BlockSpec((H1, H2), const),               # w2
                pl.BlockSpec((1, H2), const),                # b2
                pl.BlockSpec((H2, H3), const),               # w3
                pl.BlockSpec((1, H3), const),                # b3
                pl.BlockSpec((H3, HEAD_PAD), const),         # fused head W
                pl.BlockSpec((1, HEAD_PAD), const),          # fused head b
            ],
            out_specs=pl.BlockSpec((tb, HEAD_PAD), tiled),
        ),
        compiler_params=pltpu.CompilerParams(
            dimension_semantics=("parallel",),
        ),
        cost_estimate=pl.CostEstimate(
            flops=flops, transcendentals=0, bytes_accessed=bytes_accessed),
    )(
        x,
        prepped["w1"], prepped["b1"],
        prepped["w2"], prepped["b2"],
        prepped["w3"], prepped["b3"],
        prepped["wh"], prepped["bh"],
    )

    logits = out[:B, :OUTPUT_DIM]
    value = out[:B, OUTPUT_DIM:OUTPUT_DIM + 1]
    return logits, value


def init_params(key):
    """nn.Linear default init: U(-1/sqrt(fan_in), +1/sqrt(fan_in)); PyTorch
    (out, in) weight layout."""
    shapes = {
        "fc1": (H1, INPUT_DIM),
        "fc2": (H2, H1),
        "fc3": (H3, H2),
        "actor": (OUTPUT_DIM, H3),
        "critic": (1, H3),
    }
    params = {}
    for name, (out_f, in_f) in shapes.items():
        key, kw, kb = jax.random.split(key, 3)
        bound = 1.0 / jnp.sqrt(in_f)
        W = jax.random.uniform(kw, (out_f, in_f), jnp.float32, -bound, bound)
        b = jax.random.uniform(kb, (out_f,), jnp.float32, -bound, bound)
        params[name] = (W, b)
    return params


def reference_forward(x, params):
    """Pure-JAX reference matching the kernel's precision policy: bf16 matmul
    operands, f32 accumulation, f32 bias + ReLU."""
    def lin(h, name):
        W, b = params[name]
        return jnp.dot(h.astype(jnp.bfloat16), W.T.astype(jnp.bfloat16),
                       preferred_element_type=jnp.float32) + b

    h = jnp.maximum(lin(x, "fc1"), 0.0)
    h = jnp.maximum(lin(h, "fc2"), 0.0)
    h = jnp.maximum(lin(h, "fc3"), 0.0)
    return lin(h, "actor"), lin(h, "critic")


if __name__ == "__main__":
    key = jax.random.PRNGKey(0)
    key, kx = jax.random.split(key)
    B = 8
    x = jax.random.normal(kx, (B, INPUT_DIM), jnp.float32)
    params = init_params(key)
    prepped = prepare_params(params)   # one-time: transpose/fuse/bf16

    logits, value = jax.block_until_ready(actor_critic_forward(x, prepped))

    ref_logits, ref_value = reference_forward(x, params)
    assert logits.shape == (B, OUTPUT_DIM) and value.shape == (B, 1)
    assert jnp.allclose(logits, ref_logits, atol=1e-2, rtol=1e-2)
    assert jnp.allclose(value, ref_value, atol=1e-2, rtol=1e-2)

    print("KERNEL_OK")
</pallas_src>

<mosaic_0001>
module attributes {stable_mosaic.version = 11 : i64} {
  func.func @actor_critic_kernel(%arg0: i32, %arg1: memref<8x270xf32, #tpu.memory_space<vmem>>, %arg2: memref<270x512xbf16, #tpu.memory_space<vmem>>, %arg3: memref<1x512xf32, #tpu.memory_space<vmem>>, %arg4: memref<512x256xbf16, #tpu.memory_space<vmem>>, %arg5: memref<1x256xf32, #tpu.memory_space<vmem>>, %arg6: memref<256x128xbf16, #tpu.memory_space<vmem>>, %arg7: memref<1x128xf32, #tpu.memory_space<vmem>>, %arg8: memref<128x128xbf16, #tpu.memory_space<vmem>>, %arg9: memref<1x128xf32, #tpu.memory_space<vmem>>, %arg10: memref<8x128xf32, #tpu.memory_space<vmem>>) attributes {dimension_semantics = [#tpu.dimension_semantics<parallel>], iteration_bounds = array<i64: 1>, scalar_prefetch = 0 : i64, scratch_operands = 0 : i64, tpu.core_type = #tpu.core_type<tc>, window_params = [{transform_indices = @transform_0, window_bounds = array<i64: 8, 270>}, {pipeline_mode = #tpu.pipeline_mode<synchronous>, transform_indices = @transform_1, window_bounds = array<i64: 270, 512>}, {pipeline_mode = #tpu.pipeline_mode<synchronous>, transform_indices = @transform_2, window_bounds = array<i64: 1, 512>}, {pipeline_mode = #tpu.pipeline_mode<synchronous>, transform_indices = @transform_3, window_bounds = array<i64: 512, 256>}, {pipeline_mode = #tpu.pipeline_mode<synchronous>, transform_indices = @transform_4, window_bounds = array<i64: 1, 256>}, {pipeline_mode = #tpu.pipeline_mode<synchronous>, transform_indices = @transform_5, window_bounds = array<i64: 256, 128>}, {pipeline_mode = #tpu.pipeline_mode<synchronous>, transform_indices = @transform_6, window_bounds = array<i64: 1, 128>}, {pipeline_mode = #tpu.pipeline_mode<synchronous>, transform_indices = @transform_7, window_bounds = array<i64: 128, 128>}, {pipeline_mode = #tpu.pipeline_mode<synchronous>, transform_indices = @transform_8, window_bounds = array<i64: 1, 128>}, {transform_indices = @transform_9, window_bounds = array<i64: 8, 128>}]} {
    %c0 = arith.constant 0 : index
    %c0_0 = arith.constant 0 : index
    %0 = vector.load %arg1[%c0, %c0_0] : memref<8x270xf32, #tpu.memory_space<vmem>>, vector<8x270xf32>
    %1 = arith.truncf %0 : vector<8x270xf32> to vector<8x270xbf16>
    %c0_1 = arith.constant 0 : index
    %c0_2 = arith.constant 0 : index
    %2 = vector.load %arg2[%c0_1, %c0_2] : memref<270x512xbf16, #tpu.memory_space<vmem>>, vector<270x512xbf16>
    %cst = arith.constant dense<0.000000e+00> : vector<8x512xf32>
    %3 = tpu.matmul %1, %2, %cst {dimension_numbers = #tpu.dot_dimension_numbers<[1], [0], [0], [1], [0, 0, 1, 1], [], []>} : vector<8x270xbf16>, vector<270x512xbf16>, vector<8x512xf32> -> vector<8x512xf32>
    %c0_3 = arith.constant 0 : index
    %c0_4 = arith.constant 0 : index
    %4 = vector.load %arg3[%c0_3, %c0_4] : memref<1x512xf32, #tpu.memory_space<vmem>>, vector<1x512xf32>
    %5 = vector.broadcast %4 : vector<1x512xf32> to vector<8x512xf32>
    %6 = arith.addf %3, %5 : vector<8x512xf32>
    %cst_5 = arith.constant 0.000000e+00 : f32
    %7 = vector.broadcast %cst_5 : f32 to vector<8x512xf32>
    %8 = arith.maximumf %6, %7 : vector<8x512xf32>
    %9 = arith.truncf %8 : vector<8x512xf32> to vector<8x512xbf16>
    %c0_6 = arith.constant 0 : index
    %c0_7 = arith.constant 0 : index
    %10 = vector.load %arg4[%c0_6, %c0_7] : memref<512x256xbf16, #tpu.memory_space<vmem>>, vector<512x256xbf16>
    %cst_8 = arith.constant dense<0.000000e+00> : vector<8x256xf32>
    %11 = tpu.matmul %9, %10, %cst_8 {dimension_numbers = #tpu.dot_dimension_numbers<[1], [0], [0], [1], [0, 0, 1, 1], [], []>} : vector<8x512xbf16>, vector<512x256xbf16>, vector<8x256xf32> -> vector<8x256xf32>
    %c0_9 = arith.constant 0 : index
    %c0_10 = arith.constant 0 : index
    %12 = vector.load %arg5[%c0_9, %c0_10] : memref<1x256xf32, #tpu.memory_space<vmem>>, vector<1x256xf32>
    %13 = vector.broadcast %12 : vector<1x256xf32> to vector<8x256xf32>
    %14 = arith.addf %11, %13 : vector<8x256xf32>
    %cst_11 = arith.constant 0.000000e+00 : f32
    %15 = vector.broadcast %cst_11 : f32 to vector<8x256xf32>
    %16 = arith.maximumf %14, %15 : vector<8x256xf32>
    %17 = arith.truncf %16 : vector<8x256xf32> to vector<8x256xbf16>
    %c0_12 = arith.constant 0 : index
    %c0_13 = arith.constant 0 : index
    %18 = vector.load %arg6[%c0_12, %c0_13] : memref<256x128xbf16, #tpu.memory_space<vmem>>, vector<256x128xbf16>
    %cst_14 = arith.constant dense<0.000000e+00> : vector<8x128xf32>
    %19 = tpu.matmul %17, %18, %cst_14 {dimension_numbers = #tpu.dot_dimension_numbers<[1], [0], [0], [1], [0, 0, 1, 1], [], []>} : vector<8x256xbf16>, vector<256x128xbf16>, vector<8x128xf32> -> vector<8x128xf32>
    %c0_15 = arith.constant 0 : index
    %c0_16 = arith.constant 0 : index
    %20 = vector.load %arg7[%c0_15, %c0_16] : memref<1x128xf32, #tpu.memory_space<vmem>>, vector<1x128xf32>
    %21 = vector.broadcast %20 : vector<1x128xf32> to vector<8x128xf32>
    %22 = arith.addf %19, %21 : vector<8x128xf32>
    %cst_17 = arith.constant 0.000000e+00 : f32
    %23 = vector.broadcast %cst_17 : f32 to vector<8x128xf32>
    %24 = arith.maximumf %22, %23 : vector<8x128xf32>
    %25 = arith.truncf %24 : vector<8x128xf32> to vector<8x128xbf16>
    %c0_18 = arith.constant 0 : index
    %c0_19 = arith.constant 0 : index
    %26 = vector.load %arg8[%c0_18, %c0_19] : memref<128x128xbf16, #tpu.memory_space<vmem>>, vector<128x128xbf16>
    %cst_20 = arith.constant dense<0.000000e+00> : vector<8x128xf32>
    %27 = tpu.matmul %25, %26, %cst_20 {dimension_numbers = #tpu.dot_dimension_numbers<[1], [0], [0], [1], [0, 0, 1, 1], [], []>} : vector<8x128xbf16>, vector<128x128xbf16>, vector<8x128xf32> -> vector<8x128xf32>
    %c0_21 = arith.constant 0 : index
    %c0_22 = arith.constant 0 : index
    %28 = vector.load %arg9[%c0_21, %c0_22] : memref<1x128xf32, #tpu.memory_space<vmem>>, vector<1x128xf32>
    %29 = vector.broadcast %28 : vector<1x128xf32> to vector<8x128xf32>
    %30 = arith.addf %27, %29 : vector<8x128xf32>
    %c0_23 = arith.constant 0 : index
    %c0_24 = arith.constant 0 : index
    %31 = vector.load %arg10[%c0_23, %c0_24] : memref<8x128xf32, #tpu.memory_space<vmem>>, vector<8x128xf32>
    tpu.vector_store %arg10[%c0_23, %c0_24], %30 {strides = array<i32>} : memref<8x128xf32, #tpu.memory_space<vmem>>, vector<8x128xf32>,
    return
  }
  func.func @transform_0(%arg0: i32) -> (i32, i32) {
    %c0_i32 = arith.constant 0 : i32
    %c0_i32_0 = arith.constant 0 : i32
    return %arg0, %c0_i32 : i32, i32
  }
  func.func @transform_1(%arg0: i32) -> (i32, i32) {
    %c0_i32 = arith.constant 0 : i32
    %c0_i32_0 = arith.constant 0 : i32
    %c0_i32_1 = arith.constant 0 : i32
    return %c0_i32, %c0_i32_0 : i32, i32
  }
  func.func @transform_2(%arg0: i32) -> (i32, i32) {
    %c0_i32 = arith.constant 0 : i32
    %c0_i32_0 = arith.constant 0 : i32
    %c0_i32_1 = arith.constant 0 : i32
    return %c0_i32, %c0_i32_0 : i32, i32
  }
  func.func @transform_3(%arg0: i32) -> (i32, i32) {
    %c0_i32 = arith.constant 0 : i32
    %c0_i32_0 = arith.constant 0 : i32
    %c0_i32_1 = arith.constant 0 : i32
    return %c0_i32, %c0_i32_0 : i32, i32
  }
  func.func @transform_4(%arg0: i32) -> (i32, i32) {
    %c0_i32 = arith.constant 0 : i32
    %c0_i32_0 = arith.constant 0 : i32
    %c0_i32_1 = arith.constant 0 : i32
    return %c0_i32, %c0_i32_0 : i32, i32
  }
  func.func @transform_5(%arg0: i32) -> (i32, i32) {
    %c0_i32 = arith.constant 0 : i32
    %c0_i32_0 = arith.constant 0 : i32
    %c0_i32_1 = arith.constant 0 : i32
    return %c0_i32, %c0_i32_0 : i32, i32
  }
  func.func @transform_6(%arg0: i32) -> (i32, i32) {
    %c0_i32 = arith.constant 0 : i32
    %c0_i32_0 = arith.constant 0 : i32
    %c0_i32_1 = arith.constant 0 : i32
    return %c0_i32, %c0_i32_0 : i32, i32
  }
  func.func @transform_7(%arg0: i32) -> (i32, i32) {
    %c0_i32 = arith.constant 0 : i32
    %c0_i32_0 = arith.constant 0 : i32
    %c0_i32_1 = arith.constant 0 : i32
    return %c0_i32, %c0_i32_0 : i32, i32
  }
  func.func @transform_8(%arg0: i32) -> (i32, i32) {
    %c0_i32 = arith.constant 0 : i32
    %c0_i32_0 = arith.constant 0 : i32
    %c0_i32_1 = arith.constant 0 : i32
    return %c0_i32, %c0_i32_0 : i32, i32
  }
  func.func @transform_9(%arg0: i32) -> (i32, i32) {
    %c0_i32 = arith.constant 0 : i32
    %c0_i32_0 = arith.constant 0 : i32
    return %arg0, %c0_i32 : i32, i32
  }
}

</mosaic_0001>

<bundles_post_ra>
// kernel: actor_critic_forward.1
= control target key start
LH: loop header
LB: loop body
LE: loop exit
PB: predicated region body
PF: predicated region fallthrough
CT: control target
= control target key end

     0   :  { %14 = vsyncpa [#allocation3], 0  ;;  %s2210_s0 = inlined_call_operand.hbm [shape: f32[8,270], index: 0, kind: input, shape index: {}]   ;;  %s2211_s1 = inlined_call_operand.hbm [shape: bf16[270,512], index: 1, kind: input, shape index: {}]   ;;  %s2212_s2 = inlined_call_operand.hbm [shape: f32[1,512], index: 2, kind: input, shape index: {}]   ;;  %s2213_s3 = inlined_call_operand.hbm [shape: bf16[512,256], index: 3, kind: input, shape index: {}]   ;;  %s2214_s4 = inlined_call_operand.vmem [shape: f32[1,256], index: 4, kind: input, shape index: {}]   ;;  %s2215_s5 = inlined_call_operand.hbm [shape: bf16[256,128], index: 5, kind: input, shape index: {}]   ;;  %s2216_s6 = inlined_call_operand.vmem [shape: f32[1,128], index: 6, kind: input, shape index: {}]   ;;  %s2217_s7 = inlined_call_operand.hbm [shape: bf16[128,128], index: 7, kind: input, shape index: {}]   ;;  %s2218_s8 = inlined_call_operand.vmem [shape: f32[1,128], index: 8, kind: input, shape index: {}]   ;;  %s2219_s9 = inlined_call_operand.vmem [shape: f32[8,128], index: 9, kind: output, shape index: {}]  }
   0x1   :  { %15 = vsyncpa [#allocation5], 0 }
   0x2   :  { %16 = vsyncpa [#allocation8], 0 }
   0x3   :  { %17 = vsyncpa [#allocation11], 0  ;;  %s2089_s30 = smov [#allocation4]  }
   0x4   :  { %s33_s10 = sshll.u32 %s2089_s30, 4  ;;  %s34_s10 = int_to_ptr.vmem [resolvable:$true] %s33_s10 }
   0x5   :  { %s1969_s11 = scalar_lea.vmem %s34_s10, 8704  ;;  %p1974_p1 = scmp.lt.s32.totalorder %s34_s10, %s34_s10 }
   0x6   :  { %p1970_p0 = scmp.ne.s32.totalorder %s34_s10, %s1969_s11  ;;  %p1975_p2 = scmp.lt.s32.totalorder %s1969_s11, %s1969_s11 }
   0x8   :  { %p1976_p3 = por %p1975_p2, %p1974_p1 }
   0xa   :  { %p1977_p4 = pnand %p1976_p3, %p1970_p0 }
   0xc   :  { %1980 = shalt.err (!%p1977_p4)
}
   0xd   :  { %s2090_s12 = smov 256   ;;  %s2091_s13 = smov 16  }
   0xe   :  { %39 = dma.hbm_to_vmem [thread:$0]  %s2211_s1, 8704, %s34_s10, [#allocation5], %s2090_s12, %s2090_s12, %s2091_s13  }
   0xf   :  { %s2092_s16 = smov [#allocation7]  }
  0x10   :  { %s55_s17 = sshll.u32 %s2092_s16, 4  ;;  %s56_s17 = int_to_ptr.vmem [resolvable:$true] %s55_s17 }
  0x11   :  { %s1989_s18 = scalar_lea.vmem %s56_s17, 8192  ;;  %p1994_p6 = scmp.lt.s32.totalorder %s56_s17, %s56_s17 }
  0x12   :  { %p1990_p5 = scmp.ne.s32.totalorder %s56_s17, %s1989_s18  ;;  %p1995_p7 = scmp.lt.s32.totalorder %s1989_s18, %s1989_s18 }
  0x14   :  { %p1996_p8 = por %p1995_p7, %p1994_p6 }
  0x16   :  { %p1997_p9 = pnand %p1996_p8, %p1990_p5 }
  0x18   :  { %2000 = shalt.err (!%p1997_p9)
}
  0x19   :  { %s2093_s19 = smov 128   ;;  %s2094_s20 = smov 8  }
  0x1a   :  { %61 = dma.hbm_to_vmem [thread:$0]  %s2213_s3, 8192, %s56_s17, [#allocation8], %s2093_s19, %s2093_s19, %s2094_s20  }
  0x1b   :  { %s2095_s23 = smov [#allocation2]   ;;  %s2096_s25 = smov [#allocation6]  }
  0x1c   :  { %s24_s24 = sshll.u32 %s2095_s23, 4  ;;  %s46_s1 = sshll.u32 %s2096_s25, 4  ;;  %s25_s24 = int_to_ptr.vmem [resolvable:$true] %s24_s24  ;;  %s47_s1 = int_to_ptr.vmem [resolvable:$true] %s46_s1 }
  0x1d   :  { %s2009_s26 = scalar_lea.vmem %s25_s24, 384  ;;  %p2014_p11 = scmp.lt.s32.totalorder %s25_s24, %s25_s24 }
  0x1e   :  { %p2010_p10 = scmp.ne.s32.totalorder %s25_s24, %s2009_s26  ;;  %p2015_p12 = scmp.lt.s32.totalorder %s2009_s26, %s2009_s26 }
  0x20   :  { %p2016_p13 = por %p2015_p12, %p2014_p11 }
  0x22   :  { %p2017_p0 = pnand %p2016_p13, %p2010_p10 }
  0x24   :  { %2020 = shalt.err (!%p2017_p0)
}
  0x25   :  { %27 = dma.hbm_to_vmem [thread:$0]  %s2210_s0, 384, %s25_s24, [#allocation3]  }
  0x26   :  { %s2029_s29 = scalar_lea.vmem %s47_s1, 64  ;;  %p2034_p2 = scmp.lt.s32.totalorder %s47_s1, %s47_s1 }
  0x27   :  { %p2030_p1 = scmp.ne.s32.totalorder %s47_s1, %s2029_s29  ;;  %p2035_p3 = scmp.lt.s32.totalorder %s2029_s29, %s2029_s29 }
  0x29   :  { %p2036_p4 = por %p2035_p3, %p2034_p2 }
  0x2b   :  { %p2037_p5 = pnand %p2036_p4, %p2030_p1 }
  0x2d   :  { %2040 = shalt.err (!%p2037_p5)
}
  0x2e   :  { %49 = dma.hbm_to_vmem [thread:$0]  %s2212_s2, 64, %s47_s1, [#allocation5]  }
  0x2f   :  { %s2097_s10 = smov [#allocation9]  }
  0x30   :  { %s69_s11 = sshll.u32 %s2097_s10, 4  ;;  %s70_s11 = int_to_ptr.vmem [resolvable:$true] %s69_s11 }
  0x31   :  { %s2049_s12 = scalar_lea.vmem %s70_s11, 2048  ;;  %p2054_p7 = scmp.lt.s32.totalorder %s70_s11, %s70_s11 }
  0x32   :  { %p2050_p6 = scmp.ne.s32.totalorder %s70_s11, %s2049_s12  ;;  %p2055_p8 = scmp.lt.s32.totalorder %s2049_s12, %s2049_s12 }
  0x34   :  { %p2056_p9 = por %p2055_p8, %p2054_p7 }
  0x36   :  { %p2057_p10 = pnand %p2056_p9, %p2050_p6 }
  0x38   :  { %2060 = shalt.err (!%p2057_p10)
}
  0x39   :  { %s2098_s0 = smov 64   ;;  %s2099_s13 = smov 4  }
  0x3a   :  { %75 = dma.hbm_to_vmem [thread:$0]  %s2215_s5, 2048, %s70_s11, [#allocation8], %s2098_s0, %s2098_s0, %s2099_s13  }
  0x3b   :  { %s2100_s16 = smov [#allocation10]  }
  0x3c   :  { %s83_s17 = sshll.u32 %s2100_s16, 4  ;;  %s84_s17 = int_to_ptr.vmem [resolvable:$true] %s83_s17 }
  0x3d   :  { %s2069_s2 = scalar_lea.vmem %s84_s17, 1024  ;;  %p2074_p12 = scmp.lt.s32.totalorder %s84_s17, %s84_s17 }
  0x3e   :  { %p2070_p11 = scmp.ne.s32.totalorder %s84_s17, %s2069_s2  ;;  %p2075_p13 = scmp.lt.s32.totalorder %s2069_s2, %s2069_s2 }
  0x40   :  { %p2076_p0 = por %p2075_p13, %p2074_p12 }
  0x42   :  { %p2077_p1 = pnand %p2076_p0, %p2070_p11 }
  0x44   :  { %2080 = shalt.err (!%p2077_p1)
}
  0x45   :  { %89 = dma.hbm_to_vmem [thread:$0]  %s2217_s7, 1024, %s84_s17, [#allocation11], %s2098_s0, %s2098_s0, %s2099_s13  }
  0x46   :  { %2081 = dma.done.wait [#allocation3], 384  }
  0x47   :  { %2082 = vsyncadd [#allocation3], 4294966912 }
  0x48   :  { %2083 = dma.done.wait [#allocation5], 8768  }
  0x49   :  { %2084 = vsyncadd [#allocation5], 4294958528 }
  0x4a   :  { %2085 = dma.done.wait [#allocation8], 10240  }
  0x4b   :  { %2086 = vsyncadd [#allocation8], 4294957056 }
  0x4c   :  { %2087 = dma.done.wait [#allocation11], 1024  }
  0x4d   :  { %2088 = vsyncadd [#allocation11], 4294966272  ;;  %v2101_v0 = vmov 0   ;;  %v1739_v1 = vld [vmem:[#allocation4 + $0xe4] ss:$16 sps:$4 sm:$0xff]   ;;  %vm547_vm0 = vcmask 1046528  }
  0x4e   :  { %633 = vmatprep.mubr.bf16.mxu1 %v2101_v0  ;;  %v1741_v2 = vld [vmem:[#allocation4 + $0x204] ss:$16 sps:$4 sm:$0x7f]   ;;  %560 = vmatprep.subr.bf16.mxu0 %v1739_v1  ;;  %v1743_v3 = vld [vmem:[#allocation4 + $0xe0] ss:$16 sps:$4 sm:$0xff]   ;;  %v113_v6 = vld [vmem:[#allocation2 + $0x10] sm:$0xff] }
  0x4f   :  { %v1744_v4 = vld [vmem:[#allocation4 + $0x200] ss:$16 sps:$4 sm:$0x7f]   ;;  %1579 = vmatprep.subr.msk.bf16.mxu1 %vm547_vm0, %v1741_v2  ;;  %v1745_v5 = vld [vmem:[#allocation4 + $0xc4] ss:$16 sps:$4 sm:$0xff]   ;;  %561 = vmatpush1.bf16.msra.mxu0 %v1743_v3  ;;  %v2175_v8 = vpack.c.bf16 %v113_v6, %v113_v6  ;;  %vm543_vm1 = vcmask 113664  }
  0x50   :  { %v549_v7 = vsel %vm547_vm0, %v1744_v4, 0  ;;  %v1747_v9 = vld [vmem:[#allocation4 + $0xe8] ss:$16 sps:$4 sm:$0xff]   ;;  %562 = vmatprep.subr.bf16.mxu0 %v1745_v5  ;;  %v1749_v10 = vld [vmem:[#allocation4 + $0xec] ss:$16 sps:$4 sm:$0xff]   ;;  %v112_v51 = vld [vmem:[#allocation2 + $0x8] sm:$0xff] }
  0x51   :  { %616 = vmatpush1.bf16.msra.mxu1 %v549_v7  ;;  %v1750_v11 = vld [vmem:[#allocation4 + $0xc0] ss:$16 sps:$4 sm:$0xff]   ;;  %v1751_v12 = vld [vmem:[#allocation4 + $0xa4] ss:$16 sps:$4 sm:$0xff]   ;;  %v1753_v13 = vld [vmem:[#allocation4 + $0xc8] ss:$16 sps:$4 sm:$0xff]   ;;  %v115_v54 = vpack.c.bf16 %v112_v51, %v112_v51 }
  0x52   :  { %642 = vmatprep.subr.bf16.mxu1 %v1749_v10  ;;  %v1755_v14 = vld [vmem:[#allocation4 + $0xcc] ss:$16 sps:$4 sm:$0xff]   ;;  %v1756_v15 = vld [vmem:[#allocation4 + $0xa0] ss:$16 sps:$4 sm:$0xff]   ;;  %v1757_v16 = vld [vmem:[#allocation4 + $0x84] ss:$16 sps:$4 sm:$0xff]  }
  0x53   :  { %563 = vmatpush1.bf16.msra.mxu0 %v1750_v11  ;;  %v1761_v17 = vld [vmem:[#allocation4 + $0xac] ss:$16 sps:$4 sm:$0xff]   ;;  %v1762_v18 = vld [vmem:[#allocation4 + $0x80] ss:$16 sps:$4 sm:$0xff]   ;;  %v1759_v19 = vld [vmem:[#allocation4 + $0xa8] ss:$16 sps:$4 sm:$0xff]   ;;  %592 = vmatprep.mubr.bf16.mxu0 %v115_v54 }
  0x54   :  { %1580 = vmatmul.mubr.msk.bf16.vlgmr.msra.gmra.mxu1 %vm543_vm1, %v2175_v8  ;;  %564 = vmatprep.subr.bf16.mxu0 %v1751_v12  ;;  %v1763_v20 = vld [vmem:[#allocation4 + $0x64] ss:$16 sps:$4 sm:$0xff]   ;;  %v1767_v21 = vld [vmem:[#allocation4 + $0x8c] ss:$16 sps:$4 sm:$0xff]   ;;  %v1765_v22 = vld [vmem:[#allocation4 + $0x88] ss:$16 sps:$4 sm:$0xff]  }
  0x55   :  { %643 = vmatpush1.bf16.msra.mxu1 %v1747_v9  ;;  %v1768_v23 = vld [vmem:[#allocation4 + $0x60] ss:$16 sps:$4 sm:$0xff]   ;;  %v1769_v24 = vld [vmem:[#allocation4 + $0x44] ss:$16 sps:$4 sm:$0xff]   ;;  %v1773_v25 = vld [vmem:[#allocation4 + $0x6c] ss:$16 sps:$4 sm:$0xff]   ;;  %674 = vmatprep.mubr.bf16.mxu1 %v115_v54 }
  0x56   :  { %644 = vmatprep.subr.bf16.mxu1 %v1755_v14  ;;  %v1774_v26 = vld [vmem:[#allocation4 + $0x40] ss:$16 sps:$4 sm:$0xff]   ;;  %v1771_v27 = vld [vmem:[#allocation4 + $0x68] ss:$16 sps:$4 sm:$0xff]   ;;  %v1775_v28 = vld [vmem:[#allocation4 + $0x24] ss:$16 sps:$4 sm:$0xff]  }
  0x57   :  { %565 = vmatpush1.bf16.msra.mxu0 %v1756_v15  ;;  %v1779_v29 = vld [vmem:[#allocation4 + $0x4c] ss:$16 sps:$4 sm:$0xff]   ;;  %v1777_v30 = vld [vmem:[#allocation4 + $0x48] ss:$16 sps:$4 sm:$0xff]   ;;  %v1780_v31 = vld [vmem:[#allocation4 + $0x20] ss:$16 sps:$4 sm:$0xff]  }
  0x58   :  { %566 = vmatprep.subr.bf16.mxu0 %v1757_v16  ;;  %v1781_v32 = vld [vmem:[#allocation4 + $0x4] ss:$16 sps:$4 sm:$0xff]   ;;  %v1785_v33 = vld [vmem:[#allocation4 + $0x2c] ss:$16 sps:$4 sm:$0xff]   ;;  %v1786_v34 = vld [vmem:[#allocation4] ss:$16 sps:$4 sm:$0xff]  }
  0x59   :  { %645 = vmatpush1.bf16.msra.mxu1 %v1753_v13  ;;  %v1783_v35 = vld [vmem:[#allocation4 + $0x28] ss:$16 sps:$4 sm:$0xff]   ;;  %v1787_v36 = vld [vmem:[#allocation4 + $0x1e4] ss:$16 sps:$4 sm:$0xff]   ;;  %v1791_v37 = vld [vmem:[#allocation4 + $0xc] ss:$16 sps:$4 sm:$0xff]  }
  0x5a   :  { %646 = vmatprep.subr.bf16.mxu1 %v1761_v17  ;;  %v1789_v38 = vld [vmem:[#allocation4 + $0x8] ss:$16 sps:$4 sm:$0xff]   ;;  %v1792_v39 = vld [vmem:[#allocation4 + $0x1e0] ss:$16 sps:$4 sm:$0xff]   ;;  %v1793_v40 = vld [vmem:[#allocation4 + $0x1c4] ss:$16 sps:$4 sm:$0xff]  }
  0x5b   :  { %567 = vmatpush1.bf16.msra.mxu0 %v1762_v18  ;;  %v1797_v41 = vld [vmem:[#allocation4 + $0x1ec] ss:$16 sps:$4 sm:$0xff]   ;;  %v1798_v42 = vld [vmem:[#allocation4 + $0x1c0] ss:$16 sps:$4 sm:$0xff]   ;;  %v1795_v43 = vld [vmem:[#allocation4 + $0x1e8] ss:$16 sps:$4 sm:$0xff]  }
  0x5c   :  { %568 = vmatprep.subr.bf16.mxu0 %v1763_v20  ;;  %v1799_v44 = vld [vmem:[#allocation4 + $0x1a4] ss:$16 sps:$4 sm:$0xff]   ;;  %v1803_v45 = vld [vmem:[#allocation4 + $0x1cc] ss:$16 sps:$4 sm:$0xff]   ;;  %v1801_v46 = vld [vmem:[#allocation4 + $0x1c8] ss:$16 sps:$4 sm:$0xff]  }
  0x5d   :  { %647 = vmatpush1.bf16.msra.mxu1 %v1759_v19  ;;  %v1804_v47 = vld [vmem:[#allocation4 + $0x1a0] ss:$16 sps:$4 sm:$0xff]   ;;  %v1805_v48 = vld [vmem:[#allocation4 + $0x184] ss:$16 sps:$4 sm:$0xff]   ;;  %v1809_v49 = vld [vmem:[#allocation4 + $0x1ac] ss:$16 sps:$4 sm:$0xff]  }
  0x5e   :  { %648 = vmatprep.subr.bf16.mxu1 %v1767_v21  ;;  %v1807_v50 = vld [vmem:[#allocation4 + $0x1a8] ss:$16 sps:$4 sm:$0xff]   ;;  %v1810_v52 = vld [vmem:[#allocation4 + $0x180] ss:$16 sps:$4 sm:$0xff]   ;;  %v1811_v53 = vld [vmem:[#allocation4 + $0x164] ss:$16 sps:$4 sm:$0xff]  }
  0x5f   :  { %569 = vmatpush1.bf16.msra.mxu0 %v1768_v23  ;;  %v1815_v55 = vld [vmem:[#allocation4 + $0x18c] ss:$16 sps:$4 sm:$0xff]   ;;  %v1816_v56 = vld [vmem:[#allocation4 + $0x160] ss:$16 sps:$4 sm:$0xff]   ;;  %v1813_v57 = vld [vmem:[#allocation4 + $0x188] ss:$16 sps:$4 sm:$0xff]  }
  0x60   :  { %570 = vmatprep.subr.bf16.mxu0 %v1769_v24  ;;  %v1817_v58 = vld [vmem:[#allocation4 + $0x144] ss:$16 sps:$4 sm:$0xff]   ;;  %v1821_v59 = vld [vmem:[#allocation4 + $0x16c] ss:$16 sps:$4 sm:$0xff]   ;;  %v1822_v60 = vld [vmem:[#allocation4 + $0x140] ss:$16 sps:$4 sm:$0xff]  }
  0x61   :  { %649 = vmatpush1.bf16.msra.mxu1 %v1765_v22  ;;  %v1819_v61 = vld [vmem:[#allocation4 + $0x168] ss:$16 sps:$4 sm:$0xff]   ;;  %v1823_v62 = vld [vmem:[#allocation4 + $0x124] ss:$16 sps:$4 sm:$0xff]   ;;  %v1827_v63 = vld [vmem:[#allocation4 + $0x14c] ss:$16 sps:$4 sm:$0xff]  }
  0x62   :  { %650 = vmatprep.subr.bf16.mxu1 %v1773_v25  ;;  %v1828_v1 = vld [vmem:[#allocation4 + $0x120] ss:$16 sps:$4 sm:$0xff]   ;;  %v1825_v2 = vld [vmem:[#allocation4 + $0x148] ss:$16 sps:$4 sm:$0xff]   ;;  %v1829_v3 = vld [vmem:[#allocation4 + $0x104] ss:$16 sps:$4 sm:$0xff]  }
  0x63   :  { %571 = vmatpush1.bf16.msra.mxu0 %v1774_v26  ;;  %v1833_v4 = vld [vmem:[#allocation4 + $0x12c] ss:$16 sps:$4 sm:$0xff]   ;;  %v1834_v5 = vld [vmem:[#allocation4 + $0x100] ss:$16 sps:$4 sm:$0xff]   ;;  %v1831_v7 = vld [vmem:[#allocation4 + $0x128] ss:$16 sps:$4 sm:$0xff]  }
  0x64   :  { %572 = vmatprep.subr.bf16.mxu0 %v1775_v28  ;;  %v111_v6 = vld [vmem:[#allocation2] sm:$0xff]  ;;  %v1841_v15 = vld [vmem:[#allocation7 + $0x70] ss:$8 sps:$4 sm:$0xff]   ;;  %v1843_v16 = vld [vmem:[#allocation7 + $0x74] ss:$8 sps:$4 sm:$0xff]   ;;  %vm2103_vm2 = vmmov 0  }
  0x65   :  { %651 = vmatpush1.bf16.msra.mxu1 %v1771_v27  ;;  %v1838_v9 = vld [vmem:[#allocation4 + $0x20c] ss:$16 sps:$4 sm:$0x7f]   ;;  %v1840_v10 = vld [vmem:[#allocation4 + $0x208] ss:$16 sps:$4 sm:$0x7f]   ;;  %v114_v12 = vpack.c.bf16 %v111_v6, %v111_v6 }
  0x66   :  { %652 = vmatprep.subr.bf16.mxu1 %v1779_v29  ;;  %v1837_v11 = vld [vmem:[#allocation4 + $0x10c] ss:$16 sps:$4 sm:$0xff]   ;;  %v1835_v13 = vld [vmem:[#allocation4 + $0x108] ss:$16 sps:$4 sm:$0xff]   ;;  %v555_v14 = vsel %vm547_vm0, %v1840_v10, 0 }
  0x67   :  { %573 = vmatpush1.bf16.msra.mxu0 %v1780_v31  ;;  %v1846_v17 = vld [vmem:[#allocation7 + $0x64] ss:$8 sps:$4 sm:$0xff]   ;;  %v1847_v18 = vld [vmem:[#allocation7 + $0x170] ss:$8 sps:$4 sm:$0xff]   ;;  %v1849_v19 = vld [vmem:[#allocation7 + $0x174] ss:$8 sps:$4 sm:$0xff]  }
  0x68   :  { %574 = vmatprep.subr.bf16.mxu0 %v1781_v32  ;;  %v1844_v20 = vld [vmem:[#allocation7 + $0x60] ss:$8 sps:$4 sm:$0xff]   ;;  %v1855_v21 = vld [vmem:[#allocation7 + $0x164] ss:$8 sps:$4 sm:$0xff]   ;;  %v1852_v22 = vld [vmem:[#allocation7 + $0x54] ss:$8 sps:$4 sm:$0xff]  }
  0x69   :  { %653 = vmatpush1.bf16.msra.mxu1 %v1777_v30  ;;  %v1853_v23 = vld [vmem:[#allocation7 + $0x160] ss:$8 sps:$4 sm:$0xff]   ;;  %v1850_v24 = vld [vmem:[#allocation7 + $0x50] ss:$8 sps:$4 sm:$0xff]   ;;  %v1867_v26 = vld [vmem:[#allocation7 + $0x144] ss:$8 sps:$4 sm:$0xff]  }
  0x6a   :  { %654 = vmatprep.subr.bf16.mxu1 %v1785_v33  ;;  %v1859_v25 = vld [vmem:[#allocation7 + $0x150] ss:$8 sps:$4 sm:$0xff]   ;;  %v1856_v27 = vld [vmem:[#allocation7 + $0x40] ss:$8 sps:$4 sm:$0xff]   ;;  %v1864_v28 = vld [vmem:[#allocation7 + $0x34] ss:$8 sps:$4 sm:$0xff]  }
  0x6b   :  { %575 = vmatpush1.bf16.msra.mxu0 %v1786_v34  ;;  %v1865_v29 = vld [vmem:[#allocation7 + $0x140] ss:$8 sps:$4 sm:$0xff]   ;;  %v1873_v30 = vld [vmem:[#allocation7 + $0x134] ss:$8 sps:$4 sm:$0xff]   ;;  %v1862_v31 = vld [vmem:[#allocation7 + $0x30] ss:$8 sps:$4 sm:$0xff]  }
  0x6c   :  { %576 = vmatprep.subr.bf16.mxu0 %v1787_v36  ;;  %v1870_v32 = vld [vmem:[#allocation7 + $0x24] ss:$8 sps:$4 sm:$0xff]   ;;  %v1871_v33 = vld [vmem:[#allocation7 + $0x130] ss:$8 sps:$4 sm:$0xff]   ;;  %v1868_v34 = vld [vmem:[#allocation7 + $0x20] ss:$8 sps:$4 sm:$0xff]  }
  0x6d   :  { %655 = vmatpush1.bf16.msra.mxu1 %v1783_v35  ;;  %v1879_v35 = vld [vmem:[#allocation7 + $0x124] ss:$8 sps:$4 sm:$0xff]   ;;  %v1876_v36 = vld [vmem:[#allocation7 + $0x14] ss:$8 sps:$4 sm:$0xff]   ;;  %v1892_v51 = vld [vmem:[#allocation7 + $0xe0] ss:$8 sps:$4 sm:$0xff]  }
  0x6e   :  { %656 = vmatprep.subr.bf16.mxu1 %v1791_v37  ;;  %v1877_v37 = vld [vmem:[#allocation7 + $0x120] ss:$8 sps:$4 sm:$0xff]   ;;  %v1909_v54 = vld [vmem:[#allocation7 + $0x1d4] ss:$8 sps:$4 sm:$0xff]   ;;  %v1927_v6 = vld [vmem:[#allocation7 + $0x1a4] ss:$8 sps:$4 sm:$0xff]  }
  0x6f   :  { %577 = vmatpush2.bf16.msra.mxu0 %v1792_v39  ;;  %v1874_v39 = vld [vmem:[#allocation7 + $0x10] ss:$8 sps:$4 sm:$0xff]   ;;  %v1928_v10 = vld [vmem:[#allocation7 + $0x80] ss:$8 sps:$4 sm:$0xff]  }
  0x70   :  { %578 = vmatprep.subr.bf16.mxu0 %v1793_v40  ;;  %v1882_v40 = vld [vmem:[#allocation7 + $0x4] ss:$8 sps:$4 sm:$0xff]  }
  0x71   :  { %657 = vmatpush1.bf16.msra.mxu1 %v1789_v38  ;;  %v1885_v38 = vld [vmem:[#allocation7 + $0x114] ss:$8 sps:$4 sm:$0xff]  }
  0x72   :  { %658 = vmatprep.subr.bf16.mxu1 %v1797_v41  ;;  %v1883_v41 = vld [vmem:[#allocation7 + $0x110] ss:$8 sps:$4 sm:$0xff]  }
  0x73   :  { %579 = vmatpush2.bf16.msra.mxu0 %v1798_v42  ;;  %v1891_v42 = vld [vmem:[#allocation7 + $0x104] ss:$8 sps:$4 sm:$0xff]  }
  0x74   :  { %580 = vmatprep.subr.bf16.mxu0 %v1799_v44  ;;  %v1888_v44 = vld [vmem:[#allocation7 + $0xf4] ss:$8 sps:$4 sm:$0xff]  }
  0x75   :  { %659 = vmatpush2.bf16.msra.mxu1 %v1795_v43  ;;  %v1880_v43 = vld [vmem:[#allocation7] ss:$8 sps:$4 sm:$0xff]  }
  0x76   :  { %660 = vmatprep.subr.bf16.mxu1 %v1803_v45  ;;  %v1889_v45 = vld [vmem:[#allocation7 + $0x100] ss:$8 sps:$4 sm:$0xff]  }
  0x77   :  { %581 = vmatpush2.bf16.msra.mxu0 %v1804_v47  ;;  %v1886_v47 = vld [vmem:[#allocation7 + $0xf0] ss:$8 sps:$4 sm:$0xff]  }
  0x78   :  { %582 = vmatprep.subr.bf16.mxu0 %v1805_v48  ;;  %v1894_v48 = vld [vmem:[#allocation7 + $0xe4] ss:$8 sps:$4 sm:$0xff]  }
  0x79   :  { %661 = vmatpush2.bf16.msra.mxu1 %v1801_v46  ;;  %v1897_v46 = vld [vmem:[#allocation7 + $0x1f4] ss:$8 sps:$4 sm:$0xff]  }
  0x7a   :  { %662 = vmatprep.subr.bf16.mxu1 %v1809_v49  ;;  %v1895_v49 = vld [vmem:[#allocation7 + $0x1f0] ss:$8 sps:$4 sm:$0xff]  }
  0x7b   :  { %583 = vmatpush2.bf16.msra.mxu0 %v1810_v52  ;;  %v1900_v52 = vld [vmem:[#allocation7 + $0xd4] ss:$8 sps:$4 sm:$0xff]  }
  0x7c   :  { %584 = vmatprep.subr.bf16.mxu0 %v1811_v53  ;;  %v1901_v53 = vld [vmem:[#allocation7 + $0x1e0] ss:$8 sps:$4 sm:$0xff]  }
  0x7d   :  { %663 = vmatpush2.bf16.msra.mxu1 %v1807_v50  ;;  %v1903_v50 = vld [vmem:[#allocation7 + $0x1e4] ss:$8 sps:$4 sm:$0xff]  }
  0x7e   :  { %664 = vmatprep.subr.bf16.mxu1 %v1815_v55  ;;  %v1898_v55 = vld [vmem:[#allocation7 + $0xd0] ss:$8 sps:$4 sm:$0xff]  }
  0x7f   :  { %585 = vmatpush2.bf16.msra.mxu0 %v1816_v56  ;;  %v1906_v56 = vld [vmem:[#allocation7 + $0xc4] ss:$8 sps:$4 sm:$0xff]  }
  0x80   :  { %586 = vmatprep.subr.bf16.mxu0 %v1817_v58  ;;  %v1915_v58 = vld [vmem:[#allocation7 + $0x1c4] ss:$8 sps:$4 sm:$0xff]  }
  0x81   :  { %665 = vmatpush2.bf16.msra.mxu1 %v1813_v57  ;;  %v1907_v57 = vld [vmem:[#allocation7 + $0x1d0] ss:$8 sps:$4 sm:$0xff]  }
  0x82   :  { %666 = vmatprep.subr.bf16.mxu1 %v1821_v59  ;;  %v1904_v59 = vld [vmem:[#allocation7 + $0xc0] ss:$8 sps:$4 sm:$0xff]  }
  0x83   :  { %587 = vmatpush2.bf16.msra.mxu0 %v1822_v60  ;;  %v1912_v60 = vld [vmem:[#allocation7 + $0xb4] ss:$8 sps:$4 sm:$0xff]  }
  0x84   :  { %588 = vmatprep.subr.bf16.mxu0 %v1823_v62  ;;  %v1910_v62 = vld [vmem:[#allocation7 + $0xb0] ss:$8 sps:$4 sm:$0xff]  }
  0x85   :  { %667 = vmatpush2.bf16.msra.mxu1 %v1819_v61  ;;  %v1913_v61 = vld [vmem:[#allocation7 + $0x1c0] ss:$8 sps:$4 sm:$0xff]  }
  0x86   :  { %668 = vmatprep.subr.bf16.mxu1 %v1827_v63  ;;  %v1918_v63 = vld [vmem:[#allocation7 + $0xa4] ss:$8 sps:$4 sm:$0xff]  }
  0x87   :  { %589 = vmatpush2.bf16.msra.mxu0 %v1828_v1  ;;  %v1916_v1 = vld [vmem:[#allocation7 + $0xa0] ss:$8 sps:$4 sm:$0xff]  }
  0x88   :  { %590 = vmatprep.subr.bf16.mxu0 %v1829_v3  ;;  %v1919_v3 = vld [vmem:[#allocation7 + $0x1b0] ss:$8 sps:$4 sm:$0xff]  }
  0x89   :  { %669 = vmatpush2.bf16.msra.mxu1 %v1825_v2  ;;  %v1921_v2 = vld [vmem:[#allocation7 + $0x1b4] ss:$8 sps:$4 sm:$0xff]  }
  0x8a   :  { %670 = vmatprep.subr.bf16.mxu1 %v1833_v4  ;;  %v1924_v4 = vld [vmem:[#allocation7 + $0x94] ss:$8 sps:$4 sm:$0xff]  }
  0x8b   :  { %591 = vmatpush2.bf16.msra.mxu0 %v1834_v5  ;;  %v1922_v5 = vld [vmem:[#allocation7 + $0x90] ss:$8 sps:$4 sm:$0xff]  }
  0x8c   :  { %1581 = vmatprep.subr.msk.bf16.mxu0 %vm547_vm0, %v1838_v9  ;;  %v1930_v9 = vld [vmem:[#allocation7 + $0x84] ss:$8 sps:$4 sm:$0xff]  }
  0x8d   :  { %671 = vmatpush2.bf16.msra.mxu1 %v1831_v7  ;;  %v1925_v7 = vld [vmem:[#allocation7 + $0x1a0] ss:$8 sps:$4 sm:$0xff]  }
  0x8e   :  { %672 = vmatprep.subr.bf16.mxu1 %v1837_v11  ;;  %593 = vmatmul.mubr.bf16.vlgmr.msra.gmra.mxu0 %v114_v12  ;;  %v1933_v11 = vld [vmem:[#allocation7 + $0x194] ss:$8 sps:$4 sm:$0xff]  }
  0x8f   :  { %698 = vmatpush1.bf16.msra.mxu0 %v555_v14  ;;  %715 = vmatprep.mubr.bf16.mxu0 %v2101_v0  ;;  %v1861_v0 = vld [vmem:[#allocation7 + $0x154] ss:$8 sps:$4 sm:$0xff]   ;;  %v1934_v14 = vld [vmem:[#allocation7 + $0x180] ss:$8 sps:$4 sm:$0xff]  }
  0x90   :  { %1169 = vmatprep.subr.bf16.mxu0 %v1849_v19 }
  0x91   :  { %673 = vmatpush2.bf16.msra.mxu1 %v1835_v13  ;;  %v1936_v13 = vld [vmem:[#allocation7 + $0x184] ss:$8 sps:$4 sm:$0xff]  }
  0x92   :  { %1128 = vmatprep.subr.bf16.mxu1 %v1843_v16 }
  0x94   :  { %675 = vmatmul.mubr.bf16.vlgmr.msra.gmra.mxu1 %v114_v12  ;;  %v1931_v12 = vld [vmem:[#allocation7 + $0x190] ss:$8 sps:$4 sm:$0xff]  }
  0x95   :  { %1129 = vmatpush1.bf16.msra.mxu1 %v1841_v15  ;;  %v1937_v15 = vld [vmem:[#allocation9 + $0x78] sm:$0xff]  }
  0x96   :  { %1582 = vmatmul.mubr.msk.bf16.vlgmr.msra.gmra.mxu0 %vm543_vm1, %v2175_v8  ;;  %1130 = vmatprep.subr.bf16.mxu1 %v1846_v17  ;;  %v1858_v8 = vld [vmem:[#allocation7 + $0x44] ss:$8 sps:$4 sm:$0xff]  }
  0x97   :  { %1170 = vmatpush1.bf16.msra.mxu0 %v1847_v18 }
  0x98   :  { %1171 = vmatprep.subr.bf16.mxu0 %v1855_v21 }
  0x99   :  { %1131 = vmatpush1.bf16.msra.mxu1 %v1844_v20  ;;  %v187_v20 = vlaneseq }
  0x9a   :  { %1132 = vmatprep.subr.bf16.mxu1 %v1852_v22 }
  0x9b   :  { %1172 = vmatpush1.bf16.msra.mxu0 %v1853_v23  ;;  %v2184_v21 = vshrl.u32 %v187_v20, 7  ;;  %v185_v23 = vld [vmem:[#allocation6] sm:$0xf] }
  0x9c   :  { %1173 = vmatprep.subr.bf16.mxu0 %v1861_v0 }
  0x9d   :  { %1133 = vmatpush1.bf16.msra.mxu1 %v1850_v24  ;;  %v189_v22 = vsub.s32 0, %v2184_v21  ;;  %v193_v0 = vsub.s32 1, %v2184_v21 }
  0x9e   :  { %1134 = vmatprep.subr.bf16.mxu1 %v1858_v8  ;;  %v197_v8 = vsub.s32 2, %v2184_v21 }
  0x9f   :  { %1174 = vmatpush1.bf16.msra.mxu0 %v1859_v25  ;;  %v190_v24 = vrot.slane %v185_v23, %v189_v22  ;;  %v194_v25 = vrot.slane %v185_v23, %v193_v0 }
  0xa0   :  { %1175 = vmatprep.subr.bf16.mxu0 %v1867_v26 }
  0xa1   :  { %1135 = vmatpush1.bf16.msra.mxu1 %v1856_v27 }
  0xa2   :  { %1136 = vmatprep.subr.bf16.mxu1 %v1864_v28  ;;  %v201_v28 = vsub.s32 3, %v2184_v21  ;;  %v1959_v21 = vld [vmem:[#allocation10 + $0x8] sm:$0xff]  }
  0xa3   :  { %1176 = vmatpush1.bf16.msra.mxu0 %v1865_v29 }
  0xa4   :  { %1177 = vmatprep.subr.bf16.mxu0 %v1873_v30  ;;  %v198_v30 = vrot.slane %v185_v23, %v197_v8 }
  0xa5   :  { %1137 = vmatpush1.bf16.msra.mxu1 %v1862_v31 }
  0xa6   :  { %1138 = vmatprep.subr.bf16.mxu1 %v1870_v32 }
  0xa7   :  { %1178 = vmatpush1.bf16.msra.mxu0 %v1871_v33 }
  0xa8   :  { %1179 = vmatprep.subr.bf16.mxu0 %v1879_v35 }
  0xa9   :  { %1139 = vmatpush1.bf16.msra.mxu1 %v1868_v34 }
  0xaa   :  { %1140 = vmatprep.subr.bf16.mxu1 %v1876_v36  ;;  %v202_v36 = vrot.slane %v185_v23, %v201_v28 }
  0xab   :  { %1180 = vmatpush1.bf16.msra.mxu0 %v1877_v37 }
  0xac   :  { %1181 = vmatprep.subr.bf16.mxu0 %v1885_v38 }
  0xad   :  { %1141 = vmatpush1.bf16.msra.mxu1 %v1874_v39 }
  0xae   :  { %1142 = vmatprep.subr.bf16.mxu1 %v1882_v40 }
  0xaf   :  { %1182 = vmatpush1.bf16.msra.mxu0 %v1883_v41 }
  0xb0   :  { %1183 = vmatprep.subr.bf16.mxu0 %v1891_v42 }
  0xb1   :  { %1143 = vmatpush1.bf16.msra.mxu1 %v1880_v43 }
  0xb2   :  { %1144 = vmatprep.subr.bf16.mxu1 %v1888_v44 }
  0xb3   :  { %1184 = vmatpush1.bf16.msra.mxu0 %v1889_v45 }
  0xb4   :  { %1185 = vmatprep.subr.bf16.mxu0 %v1897_v46 }
  0xb5   :  { %1145 = vmatpush2.bf16.msra.mxu1 %v1886_v47  ;;  %v1938_v47 = vld [vmem:[#allocation9 + $0x38] sm:$0xff]  }
  0xb6   :  { %1146 = vmatprep.subr.bf16.mxu1 %v1894_v48 }
  0xb7   :  { %1186 = vmatpush2.bf16.msra.mxu0 %v1895_v49 }
  0xb8   :  { %1187 = vmatprep.subr.bf16.mxu0 %v1903_v50  ;;  %v1939_v50 = vld [vmem:[#allocation9 + $0x70] sm:$0xff]  }
  0xb9   :  { %1147 = vmatpush2.bf16.msra.mxu1 %v1892_v51 }
  0xba   :  { %1148 = vmatprep.subr.bf16.mxu1 %v1900_v52 }
  0xbb   :  { %1188 = vmatpush2.bf16.msra.mxu0 %v1901_v53 }
  0xbc   :  { %1189 = vmatprep.subr.bf16.mxu0 %v1909_v54 }
  0xbd   :  { %1149 = vmatpush2.bf16.msra.mxu1 %v1898_v55 }
  0xbe   :  { %1150 = vmatprep.subr.bf16.mxu1 %v1906_v56  ;;  %v1940_v56 = vld [vmem:[#allocation9 + $0x30] sm:$0xff]  }
  0xbf   :  { %1190 = vmatpush2.bf16.msra.mxu0 %v1907_v57 }
  0xc0   :  { %1191 = vmatprep.subr.bf16.mxu0 %v1915_v58  ;;  %v1941_v58 = vld [vmem:[#allocation9 + $0x68] sm:$0xff]  }
  0xc1   :  { %1151 = vmatpush2.bf16.msra.mxu1 %v1904_v59 }
  0xc2   :  { %1152 = vmatprep.subr.bf16.mxu1 %v1912_v60 }
  0xc3   :  { %1192 = vmatpush2.bf16.msra.mxu0 %v1913_v61  ;;  %v1942_v61 = vld [vmem:[#allocation9 + $0x28] sm:$0xff]  }
  0xc4   :  { %1193 = vmatprep.subr.bf16.mxu0 %v1921_v2  ;;  %v1946_v2 = vld [vmem:[#allocation9 + $0x18] sm:$0xff]  }
  0xc5   :  { %1153 = vmatpush2.bf16.msra.mxu1 %v1910_v62  ;;  %v1943_v62 = vld [vmem:[#allocation9 + $0x60] sm:$0xff]  }
  0xc6   :  { %1154 = vmatprep.subr.bf16.mxu1 %v1918_v63  ;;  %v1944_v63 = vld [vmem:[#allocation9 + $0x20] sm:$0xff]  }
  0xc7   :  { %1194 = vmatpush2.bf16.msra.mxu0 %v1919_v3  ;;  %v1947_v3 = vld [vmem:[#allocation9 + $0x50] sm:$0xff]  }
  0xc8   :  { %1195 = vmatprep.subr.bf16.mxu0 %v1927_v6  ;;  %v1950_v6 = vld [vmem:[#allocation9 + $0x8] sm:$0xff]  }
  0xc9   :  { %1155 = vmatpush2.bf16.msra.mxu1 %v1916_v1  ;;  %v1945_v1 = vld [vmem:[#allocation9 + $0x58] sm:$0xff]  }
  0xca   :  { %1156 = vmatprep.subr.bf16.mxu1 %v1924_v4  ;;  %v1948_v4 = vld [vmem:[#allocation9 + $0x10] sm:$0xff]  }
  0xcb   :  { %1196 = vmatpush2.bf16.msra.mxu0 %v1925_v7  ;;  %v1951_v7 = vld [vmem:[#allocation9 + $0x40] sm:$0xff]  }
  0xcc   :  { %1197 = vmatprep.subr.bf16.mxu0 %v1933_v11  ;;  %v2102_v11 = vmov 0.0  }
  0xcd   :  { %1157 = vmatpush2.bf16.msra.mxu1 %v1922_v5  ;;  %v1949_v5 = vld [vmem:[#allocation9 + $0x48] sm:$0xff]  }
  0xce   :  { %1158 = vmatprep.subr.bf16.mxu1 %v1930_v9  ;;  %v1952_v9 = vld [vmem:[#allocation9] sm:$0xff]  }
  0xcf   :  { %1198 = vmatpush2.bf16.msra.mxu0 %v1931_v12  ;;  %v1954_v12 = vld [vmem:[#allocation10 + $0x30] sm:$0xff]  }
  0xd0   :  { %1199 = vmatprep.subr.bf16.mxu0 %v1936_v13  ;;  %v1955_v13 = vld [vmem:[#allocation10 + $0x28] sm:$0xff]  }
  0xd1   :  { %1159 = vmatpush2.bf16.msra.mxu1 %v1928_v10  ;;  %v1953_v10 = vld [vmem:[#allocation10 + $0x38] sm:$0xff]  }
  0xd2   :  { %1673 = vmatprep.subr.bf16.mxu1 %v1937_v15  ;;  %v1957_v15 = vld [vmem:[#allocation10 + $0x18] sm:$0xff]  }
  0xd3   :  { %1200 = vmatpush2.bf16.msra.mxu0 %v1934_v14  ;;  %v1956_v14 = vld [vmem:[#allocation10 + $0x20] sm:$0xff]  }
  0xd4   :  { %1704 = vmatprep.subr.bf16.mxu0 %v2102_v11 }
 0x114   :  { %v635_v16 = vpop.f32.mrf.mxu1 }
 0x116   :  { %v637_v17 = vpop.f32.mrf.mxu1 }
 0x118   :  { %v639_v18 = vpop.f32.mrf.mxu1 }
 0x11a   :  { %v640_v19 = vpop.f32.mrf.mxu1 }
 0x14e   :  { %v594_v26 = vpop.f32.mrf.mxu0 }
 0x14f   :  { %v595_v27 = vadd.f32 %v594_v26, %v190_v24 }
 0x150   :  { %v596_v29 = vpop.f32.mrf.mxu0 }
 0x151   :  { %v636_v31 = vadd.f32 %v635_v16, %v595_v27  ;;  %v597_v32 = vadd.f32 %v596_v29, %v194_v25  ;;  %v796_v16 = vld [vmem:[%s2214_s4] sm:$0x3] }
 0x152   :  { %v598_v33 = vpop.f32.mrf.mxu0  ;;  %v801_v18 = vrot.slane %v796_v16, %v189_v22  ;;  %v805_v20 = vrot.slane %v796_v16, %v193_v0  ;;  %v1958_v22 = vld [vmem:[#allocation10 + $0x10] sm:$0xff]   ;;  %v1960_v0 = vld [vmem:[#allocation10] sm:$0xff]  }
 0x153   :  { %v638_v34 = vadd.f32 %v637_v17, %v597_v32  ;;  %v724_v37 = vmax.f32 %v636_v31, 0.0 }
 0x154   :  { %v676_v35 = vpop.f32.mrf.mxu1  ;;  %v599_v39 = vpop.f32.mrf.mxu0 }
 0x155   :  { %v677_v38 = vadd.f32 %v676_v35, %v198_v30  ;;  %v725_v40 = vmax.f32 %v638_v34, 0.0  ;;  %v728_v48 = vpack.c.bf16 %v724_v37, %v724_v37  ;;  %v1647_v37 = vld [vmem:[%s2216_s6] ss:$0 sm:$0xff] }
 0x156   :  { %v678_v41 = vpop.f32.mrf.mxu1  ;;  %v717_v42 = vpop.f32.mrf.mxu0 }
 0x157   :  { %v729_v43 = vpack.c.bf16 %v725_v40, %v725_v40  ;;  %v679_v44 = vadd.f32 %v678_v41, %v202_v36  ;;  %v718_v46 = vadd.f32 %v717_v42, %v677_v38 }
 0x158   :  { %v680_v45 = vpop.f32.mrf.mxu1  ;;  %v719_v49 = vpop.f32.mrf.mxu0 }
 0x159   :  { %v720_v52 = vadd.f32 %v719_v49, %v679_v44  ;;  %1160 = vmatprep.mubr.bf16.mxu1 %v729_v43  ;;  %v726_v53 = vmax.f32 %v718_v46, 0.0  ;;  %v1664_v45 = vld [vmem:[%s2218_s8] ss:$0 sm:$0xff] }
 0x15a   :  { %v681_v51 = vpop.f32.mrf.mxu1  ;;  %v721_v54 = vpop.f32.mrf.mxu0  ;;  %1161 = vmatmul.mubr.bf16.vlgmr.msra.gmra.mxu1 %v728_v48 }
 0x15b   :  { %v727_v55 = vmax.f32 %v720_v52, 0.0  ;;  %1674 = vmatpush3.bf16.msra.mxu1 %v1938_v47  ;;  %v730_v60 = vpack.c.bf16 %v726_v53, %v726_v53 }
 0x15c   :  { %v722_v57 = vpop.f32.mrf.mxu0  ;;  %1675 = vmatprep.subr.bf16.mxu1 %v1939_v50 }
 0x15d   :  { %v731_v59 = vpack.c.bf16 %v727_v55, %v727_v55 }
 0x15f   :  { %1201 = vmatprep.mubr.bf16.mxu0 %v731_v59  ;;  %1676 = vmatpush3.bf16.msra.mxu1 %v1940_v56 }
 0x160   :  { %1202 = vmatmul.mubr.bf16.vlgmr.msra.gmra.mxu0 %v730_v60  ;;  %1677 = vmatprep.subr.bf16.mxu1 %v1941_v58 }
 0x161   :  { %1705 = vmatpush3.bf16.msra.mxu0 %v1953_v10  ;;  %1720 = vmatprep.mubr.msk.bf16.mxu0 %vm2103_vm2, %v2102_v11 }
 0x162   :  { %1706 = vmatprep.subr.bf16.mxu0 %v2102_v11 }
 0x163   :  { %1678 = vmatpush3.bf16.msra.mxu1 %v1942_v61 }
 0x164   :  { %1679 = vmatprep.subr.bf16.mxu1 %v1943_v62 }
 0x165   :  { %1707 = vmatpush3.bf16.msra.mxu0 %v1954_v12 }
 0x166   :  { %1708 = vmatprep.subr.bf16.mxu0 %v2102_v11 }
 0x167   :  { %1680 = vmatpush3.bf16.msra.mxu1 %v1944_v63 }
 0x168   :  { %1681 = vmatprep.subr.bf16.mxu1 %v1945_v1 }
 0x169   :  { %1709 = vmatpush3.bf16.msra.mxu0 %v1955_v13 }
 0x16a   :  { %1710 = vmatprep.subr.bf16.mxu0 %v2102_v11 }
 0x16b   :  { %1682 = vmatpush3.bf16.msra.mxu1 %v1946_v2 }
 0x16c   :  { %1683 = vmatprep.subr.bf16.mxu1 %v1947_v3 }
 0x16d   :  { %1711 = vmatpush3.bf16.msra.mxu0 %v1956_v14 }
 0x16e   :  { %1712 = vmatprep.subr.bf16.mxu0 %v2102_v11 }
 0x16f   :  { %1684 = vmatpush3.bf16.msra.mxu1 %v1948_v4 }
 0x170   :  { %1685 = vmatprep.subr.bf16.mxu1 %v1949_v5 }
 0x171   :  { %1713 = vmatpush3.bf16.msra.mxu0 %v1957_v15 }
 0x172   :  { %1714 = vmatprep.subr.bf16.mxu0 %v2102_v11 }
 0x173   :  { %1686 = vmatpush3.bf16.msra.mxu1 %v1950_v6 }
 0x174   :  { %1687 = vmatprep.subr.bf16.mxu1 %v1951_v7 }
 0x175   :  { %1715 = vmatpush3.bf16.msra.mxu0 %v1958_v22 }
 0x176   :  { %1716 = vmatprep.subr.bf16.mxu0 %v2102_v11 }
 0x177   :  { %1688 = vmatpush3.bf16.msra.mxu1 %v1952_v9 }
 0x179   :  { %1717 = vmatpush3.bf16.msra.mxu0 %v1959_v21 }
 0x17a   :  { %1718 = vmatprep.subr.bf16.mxu0 %v2102_v11 }
 0x17d   :  { %1719 = vmatpush3.bf16.msra.mxu0 %v1960_v0 }
 0x21a   :  { %v1162_v17 = vpop.f32.mrf.mxu1 }
 0x21b   :  { %v1163_v24 = vadd.f32 %v1162_v17, %v801_v18 }
 0x21c   :  { %v1164_v19 = vpop.f32.mrf.mxu1 }
 0x21d   :  { %v1165_v26 = vadd.f32 %v1164_v19, %v805_v20 }
 0x21e   :  { %v1166_v23 = vpop.f32.mrf.mxu1 }
 0x220   :  { %v1167_v8 = vpop.f32.mrf.mxu1  ;;  %v1203_v25 = vpop.f32.mrf.mxu0 }
 0x221   :  { %v1204_v27 = vadd.f32 %v1203_v25, %v1163_v24 }
 0x222   :  { %v1205_v28 = vpop.f32.mrf.mxu0 }
 0x223   :  { %v1206_v29 = vadd.f32 %v1205_v28, %v1165_v26  ;;  %v1210_v30 = vmax.f32 %v1204_v27, 0.0 }
 0x224   :  { %v1207_v31 = vpop.f32.mrf.mxu0 }
 0x225   :  { %v1211_v32 = vmax.f32 %v1206_v29, 0.0  ;;  %v1212_v35 = vpack.c.bf16 %v1210_v30, %v1210_v30 }
 0x226   :  { %v1208_v33 = vpop.f32.mrf.mxu0 }
 0x227   :  { %v1213_v34 = vpack.c.bf16 %v1211_v32, %v1211_v32 }
 0x229   :  { %1381 = vmatprep.mubr.bf16.mxu1 %v1213_v34 }
 0x22a   :  { %1382 = vmatmul.mubr.bf16.vlgmr.msra.gmra.mxu1 %v1212_v35 }
 0x2ea   :  { %v1689_v36 = vpop.f32.mrf.mxu1 }
 0x2ec   :  { %v1690_v38 = vpop.f32.mrf.mxu1 }
 0x2ed   :  { %v1691_v39 = vadd.f32 %v1690_v38, %v1689_v36 }
 0x2ee   :  { %v1692_v40 = vpop.f32.mrf.mxu1 }
 0x2ef   :  { %v1384_v41 = vadd.f32 %v1691_v39, %v1647_v37 }
 0x2f0   :  { %v1693_v42 = vpop.f32.mrf.mxu1 }
 0x2f1   :  { %v1389_v43 = vmax.f32 %v1384_v41, 0.0 }
 0x2f3   :  { %v1390_v44 = vpack.c.bf16 %v1389_v43, %v1389_v43 }
 0x2f5   :  { %1721 = vmatmul.mubr.bf16.vlgmr.msra.gmra.mxu0 %v1390_v44 }
 0x3b5   :  { %v1496_v46 = vpop.f32.mrf.mxu0 }
 0x3b6   :  { %v1497_v47 = vadd.f32 %v1664_v45, %v1496_v46 }
 0x3b7   :  { %v1722_v48 = vpop.f32.mrf.mxu0 }
 0x3b8   :  { %1502 = vst [vmem:[%s2219_s9] sm:$0xff] %v1497_v47 }
 0x3b9   :  { %v1499_v49 = vpop.f32.mrf.mxu0 }
 0x3bb   :  { %v1723_v50 = vpop.f32.mrf.mxu0 }
 0x3bc   :  { %1507 = vsyncpa [#allocation3], 1 }
 0x3bd   :  { %1508 = vsyncpa [#allocation5], 1 }
 0x3be   :  { %1509 = vsyncpa [#allocation8], 1 }
 0x3bf   :  { %1510 = vsyncpa [#allocation11], 1 }

</bundles_post_ra>
